<compile_context>
chip_gen: v7x
topology: tpu7x:2x2x1
jax: 0.10.0
libtpu: 0.0.40
codegen_flags: <defaults>
</compile_context>

<pallas_src>
import numpy as np
import jax
import jax.numpy as jnp
from jax.experimental import pallas as pl
from jax.experimental.pallas import tpu as pltpu


# ----------------------------------------------------------------------------
# Noise schedule (numpy, identical math to the torch module's __init__)
# ----------------------------------------------------------------------------
def cosine_noise_schedule(timesteps, s=0.008):
    steps = timesteps + 1
    x = np.linspace(0, steps, steps)
    alphas_cumprod = np.cos((x / steps + s) / (1 + s) * np.pi * 0.5) ** 2
    alphas_cumprod = alphas_cumprod / alphas_cumprod[0]
    betas = 1 - alphas_cumprod[1:] / alphas_cumprod[:-1]
    return np.clip(betas, a_min=0, a_max=0.999)


def build_schedule(timesteps):
    betas = cosine_noise_schedule(timesteps)
    alphas = 1.0 - betas
    acp = np.cumprod(alphas)
    acp_prev = np.append(1.0, acp[:-1])
    pv = betas * (1.0 - acp_prev) / (1.0 - acp)
    return dict(
        sqrt_alphas_cumprod=np.sqrt(acp),
        sqrt_one_minus_alphas_cumprod=np.sqrt(1.0 - acp),
        posterior_mean_coef1=betas * np.sqrt(acp_prev) / (1.0 - acp),
        posterior_mean_coef2=(1.0 - acp_prev) * np.sqrt(alphas) / (1.0 - acp),
        posterior_log_variance_clipped=np.log(np.append(pv[1], pv[1:])),
    )


def timestep_embedding(t, dim):
    """Sinusoidal embedding; works for Python ints and traced scalars."""
    half = dim // 2
    freqs = jnp.exp(-jnp.log(10000.0) * jnp.arange(half, dtype=jnp.float32) / half)
    ang = jnp.asarray(t, jnp.float32) * freqs
    return jnp.concatenate([jnp.sin(ang), jnp.cos(ang)])


# ----------------------------------------------------------------------------
# Fused kernel: q_sample -> model -> model(+clip) -> branch-free loss
# Only static shape ints are closed over; every scalar comes from SMEM.
# ----------------------------------------------------------------------------
def make_fused_kernel(C, HW, TB):
    def kernel(p_ref, w_ref, b_ref, xn_ref, o_ref):
        # p_ref : SMEM (8,)  f32  [a, b, alpha, beta, gamma, scale, offset, _]
        # w_ref : SMEM (C*C,) f32  flattened channel-mix weights (row = in, col = out)
        # b_ref : SMEM (C,)  f32  per-channel time bias
        # xn_ref: VMEM block (2, C, TB, HW)  [0]=x_start, [1]=noise
        # o_ref : VMEM block (1, 8, 128)     per-batch losses in rows 0..TB-1, col 0
        a = p_ref[0]
        bq = p_ref[1]
        alpha = p_ref[2]
        beta = p_ref[3]
        gamma = p_ref[4]
        scale = p_ref[5]
        offset = p_ref[6]

        # q_sample, per-channel (TB, HW) slabs -> sublane(batch) x lane(HW) dense.
        xs = [xn_ref[0, ci] for ci in range(C)]
        xnz = [a * xs[ci] + bq * xn_ref[1, ci] for ci in range(C)]

        # model call #1: x0[co] = sum_ci W[ci,co]*x_noisy[ci] + bias[co]  (VPU FMAs)
        x0 = []
        for co in range(C):
            acc = xnz[0] * w_ref[co]
            for ci in range(1, C):
                acc = acc + xnz[ci] * w_ref[ci * C + co]
            x0.append(acc + b_ref[co])

        # model call #2 (p_mean_variance, clip_denoised=True), fused with the
        # branch-free loss residual d = alpha*x_start + beta*x0 + gamma*x_recon.
        dsq = None
        for co in range(C):
            acc = x0[0] * w_ref[co]
            for ci in range(1, C):
                acc = acc + x0[ci] * w_ref[ci * C + co]
            xr = jnp.clip(acc + b_ref[co], -1.0, 1.0)
            d = alpha * xs[co] + beta * x0[co] + gamma * xr
            dsq = d * d if dsq is None else dsq + d * d      # VPU accumulation

        ssum = jnp.sum(dsq, axis=-1, keepdims=True)          # (TB, 1) single XLU reduce
        loss = scale * ssum + offset                          # per-batch losses

        if TB < 8:
            o_ref[...] = jnp.zeros_like(o_ref)               # deterministic tile
        o_ref[0, 0:TB, :] = jnp.broadcast_to(loss, (TB, 128))
    return kernel


# ----------------------------------------------------------------------------
# Wrapper: layout plumbing + schedule gathers + branch folding (all traced in t)
# ----------------------------------------------------------------------------
def diffusion_forward(x_nchw, noise_nchw, Wm, bm, Wt, sched, t):
    B, C, H, W = x_nchw.shape
    HW = H * W
    TB = B if B <= 8 else 8        # batch elements per grid step (fills sublanes at 8)
    assert B % TB == 0
    G = B // TB

    # Layout: (B,C,H,W) -> (C, B, HW); stack x & noise so one DMA feeds each step.
    x_c = jnp.transpose(x_nchw.reshape(B, C, HW), (1, 0, 2))
    n_c = jnp.transpose(noise_nchw.reshape(B, C, HW), (1, 0, 2))
    xn = jnp.stack([x_c, n_c], axis=0).astype(jnp.float32)        # (2, C, B, HW)

    # Synthetic denoiser bias from the time embedding (traced in t).
    bias = (bm + timestep_embedding(t, Wt.shape[0]) @ Wt).astype(jnp.float32)   # (C,)

    # Schedule gathers (traced -> one compiled program for every t).
    a = sched['sqrt_alphas_cumprod'][t]
    bq = sched['sqrt_one_minus_alphas_cumprod'][t]
    c1 = sched['posterior_mean_coef1'][t]
    c2 = sched['posterior_mean_coef2'][t]
    plv = sched['posterior_log_variance_clipped'][t]

    # Fold the t==0 (decoder NLL) / t!=0 (KL) branch into scalar coefficients:
    #   d    = alpha*x_start + beta*x0 + gamma*clip(x_recon)
    #   loss = scale * sum(d^2) + offset
    is_t0 = (t == 0)
    ln2 = jnp.float32(np.log(2.0))
    inv_n = jnp.float32(1.0 / (C * HW))
    log_scales = jnp.maximum(0.5 * plv, 1e-12)                    # torch clamp(min=1e-12)
    kl_coef = c1 * c1 / (2.0 * jnp.exp(plv))
    nll_coef = 0.5 * jnp.exp(-2.0 * log_scales)
    alpha = jnp.where(is_t0, 0.0, 1.0)
    beta = jnp.where(is_t0, 1.0 - c2, 0.0)
    gamma = jnp.where(is_t0, -c1, -1.0)
    scale = jnp.where(is_t0, nll_coef, kl_coef) * inv_n / ln2
    offset = jnp.where(is_t0, log_scales + 0.5 * np.log(2.0 * np.pi), -0.5) / ln2

    params = jnp.stack([a, bq, alpha, beta, gamma, scale, offset,
                        jnp.float32(0.0)]).astype(jnp.float32)     # (8,) -> SMEM
    w_flat = Wm.reshape(-1).astype(jnp.float32)                    # (C*C,) -> SMEM

    out = pl.pallas_call(
        make_fused_kernel(C, HW, TB),
        out_shape=jax.ShapeDtypeStruct((G, 8, 128), jnp.float32),
        grid=(G,),
        in_specs=[
            pl.BlockSpec(memory_space=pltpu.MemorySpace.SMEM),     # params
            pl.BlockSpec(memory_space=pltpu.MemorySpace.SMEM),     # W (flattened)
            pl.BlockSpec(memory_space=pltpu.MemorySpace.SMEM),     # bias
            pl.BlockSpec((2, C, TB, HW), lambda g: (0, 0, g, 0)),  # stacked x/noise
        ],
        out_specs=pl.BlockSpec((1, 8, 128), lambda g: (g, 0, 0)),
        compiler_params=pltpu.CompilerParams(
            dimension_semantics=("parallel",)),                    # batch tiles over TCs
    )(params, w_flat, bias, xn)

    return out[:, :TB, 0].reshape(B)                               # (B,) per-batch loss


# ----------------------------------------------------------------------------
# Pure-JAX reference of the same forward (correctness check, host int t)
# ----------------------------------------------------------------------------
def reference_forward(x_nchw, noise_nchw, Wm, bm, Wt, sched_np, t):
    B, C, H, W = x_nchw.shape
    x_nc = jnp.transpose(x_nchw, (0, 2, 3, 1)).reshape(B * H * W, C)
    n_nc = jnp.transpose(noise_nchw, (0, 2, 3, 1)).reshape(B * H * W, C)
    bias = bm + timestep_embedding(t, Wt.shape[0]) @ Wt
    a = sched_np['sqrt_alphas_cumprod'][t]
    b = sched_np['sqrt_one_minus_alphas_cumprod'][t]
    x_noisy = a * x_nc + b * n_nc
    x0 = x_noisy @ Wm + bias
    xr = jnp.clip(x0 @ Wm + bias, -1.0, 1.0)
    c1 = sched_np['posterior_mean_coef1'][t]
    c2 = sched_np['posterior_mean_coef2'][t]
    plv = sched_np['posterior_log_variance_clipped'][t]
    xs_f = x_nc.reshape(B, -1)
    xt_f = x0.reshape(B, -1)
    xr_f = xr.reshape(B, -1)
    real_mean = c1 * xs_f + c2 * xt_f
    model_mean = c1 * xr_f + c2 * xt_f
    kl = -1.0 + (np.exp(plv) + (real_mean - model_mean) ** 2) / (2.0 * np.exp(plv))
    kl = jnp.mean(kl, axis=-1) / np.log(2.0)
    ls = max(0.5 * plv, 1e-12)
    nll = 0.5 * ((xt_f - model_mean) * np.exp(-ls)) ** 2 + ls + 0.5 * np.log(2 * np.pi)
    nll = jnp.mean(nll, axis=-1) / np.log(2.0)
    return nll if t == 0 else kl


if __name__ == "__main__":
    B, C, H, W = 2, 4, 16, 16
    E = 16
    timesteps = 1000
    sched_np = build_schedule(timesteps)
    sched = {k: jnp.asarray(v, jnp.float32) for k, v in sched_np.items()}

    key = jax.random.PRNGKey(0)
    kx, kn, kw, kb, kt = jax.random.split(key, 5)
    x = jax.random.normal(kx, (B, C, H, W), dtype=jnp.float32)       # NCHW input
    noise = jax.random.normal(kn, (B, C, H, W), dtype=jnp.float32)   # torch.randn_like
    Wm = jax.random.normal(kw, (C, C), dtype=jnp.float32) / np.sqrt(C)
    bm = jax.random.normal(kb, (C,), dtype=jnp.float32) * 0.01
    Wt = jax.random.normal(kt, (E, C), dtype=jnp.float32) * 0.1

    fwd = jax.jit(diffusion_forward)

    # t is drawn on the host (like the torch module) but passed as a traced
    # device scalar: both calls below reuse the SAME compiled program.
    t_rand = int(np.random.RandomState(0).randint(0, timesteps))
    for t in (t_rand, 0):          # exercise both the KL and decoder-NLL branches
        loss = jax.block_until_ready(
            fwd(x, noise, Wm, bm, Wt, sched, jnp.asarray(t, dtype=jnp.int32)))
        ref = jax.block_until_ready(
            reference_forward(x, noise, Wm, bm, Wt, sched_np, t))
        assert loss.shape == (B,)
        np.testing.assert_allclose(np.asarray(loss), np.asarray(ref),
                                   rtol=1e-3, atol=1e-3)

    print("KERNEL_OK")
</pallas_src>

<mosaic_0001>
module attributes {stable_mosaic.version = 11 : i64} {
  func.func @kernel(%arg0: i32, %arg1: memref<8xf32, #tpu.memory_space<smem>>, %arg2: memref<16xf32, #tpu.memory_space<smem>>, %arg3: memref<4xf32, #tpu.memory_space<smem>>, %arg4: memref<2x4x2x256xf32, #tpu.memory_space<vmem>>, %arg5: memref<1x8x128xf32, #tpu.memory_space<vmem>>) attributes {dimension_semantics = [#tpu.dimension_semantics<parallel>], iteration_bounds = array<i64: 1>, scalar_prefetch = 0 : i64, scratch_operands = 0 : i64, tpu.core_type = #tpu.core_type<tc>, window_params = [{transform_indices = @transform_0, window_bounds = array<i64: 8>}, {transform_indices = @transform_1, window_bounds = array<i64: 16>}, {transform_indices = @transform_2, window_bounds = array<i64: 4>}, {transform_indices = @transform_3, window_bounds = array<i64: 2, 4, 2, 256>}, {transform_indices = @transform_4, window_bounds = array<i64: 1, 8, 128>}]} {
    %c0 = arith.constant 0 : index
    %0 = memref.load %arg1[%c0] : memref<8xf32, #tpu.memory_space<smem>>
    %c1 = arith.constant 1 : index
    %1 = memref.load %arg1[%c1] : memref<8xf32, #tpu.memory_space<smem>>
    %c2 = arith.constant 2 : index
    %2 = memref.load %arg1[%c2] : memref<8xf32, #tpu.memory_space<smem>>
    %c3 = arith.constant 3 : index
    %3 = memref.load %arg1[%c3] : memref<8xf32, #tpu.memory_space<smem>>
    %c4 = arith.constant 4 : index
    %4 = memref.load %arg1[%c4] : memref<8xf32, #tpu.memory_space<smem>>
    %c5 = arith.constant 5 : index
    %5 = memref.load %arg1[%c5] : memref<8xf32, #tpu.memory_space<smem>>
    %c6 = arith.constant 6 : index
    %6 = memref.load %arg1[%c6] : memref<8xf32, #tpu.memory_space<smem>>
    %c0_0 = arith.constant 0 : index
    %c0_1 = arith.constant 0 : index
    %c0_2 = arith.constant 0 : index
    %c0_3 = arith.constant 0 : index
    %7 = vector.load %arg4[%c0_0, %c0_1, %c0_2, %c0_3] : memref<2x4x2x256xf32, #tpu.memory_space<vmem>>, vector<1x1x2x256xf32>
    %8 = vector.shape_cast %7 : vector<1x1x2x256xf32> to vector<2x256xf32>
    %c0_4 = arith.constant 0 : index
    %c1_5 = arith.constant 1 : index
    %c0_6 = arith.constant 0 : index
    %c0_7 = arith.constant 0 : index
    %9 = vector.load %arg4[%c0_4, %c1_5, %c0_6, %c0_7] : memref<2x4x2x256xf32, #tpu.memory_space<vmem>>, vector<1x1x2x256xf32>
    %10 = vector.shape_cast %9 : vector<1x1x2x256xf32> to vector<2x256xf32>
    %c0_8 = arith.constant 0 : index
    %c2_9 = arith.constant 2 : index
    %c0_10 = arith.constant 0 : index
    %c0_11 = arith.constant 0 : index
    %11 = vector.load %arg4[%c0_8, %c2_9, %c0_10, %c0_11] : memref<2x4x2x256xf32, #tpu.memory_space<vmem>>, vector<1x1x2x256xf32>
    %12 = vector.shape_cast %11 : vector<1x1x2x256xf32> to vector<2x256xf32>
    %c0_12 = arith.constant 0 : index
    %c3_13 = arith.constant 3 : index
    %c0_14 = arith.constant 0 : index
    %c0_15 = arith.constant 0 : index
    %13 = vector.load %arg4[%c0_12, %c3_13, %c0_14, %c0_15] : memref<2x4x2x256xf32, #tpu.memory_space<vmem>>, vector<1x1x2x256xf32>
    %14 = vector.shape_cast %13 : vector<1x1x2x256xf32> to vector<2x256xf32>
    %15 = vector.broadcast %0 : f32 to vector<2x256xf32>
    %16 = arith.mulf %15, %8 : vector<2x256xf32>
    %c1_16 = arith.constant 1 : index
    %c0_17 = arith.constant 0 : index
    %c0_18 = arith.constant 0 : index
    %c0_19 = arith.constant 0 : index
    %17 = vector.load %arg4[%c1_16, %c0_17, %c0_18, %c0_19] : memref<2x4x2x256xf32, #tpu.memory_space<vmem>>, vector<1x1x2x256xf32>
    %18 = vector.shape_cast %17 : vector<1x1x2x256xf32> to vector<2x256xf32>
    %19 = vector.broadcast %1 : f32 to vector<2x256xf32>
    %20 = arith.mulf %19, %18 : vector<2x256xf32>
    %21 = arith.addf %16, %20 : vector<2x256xf32>
    %22 = vector.broadcast %0 : f32 to vector<2x256xf32>
    %23 = arith.mulf %22, %10 : vector<2x256xf32>
    %c1_20 = arith.constant 1 : index
    %c1_21 = arith.constant 1 : index
    %c0_22 = arith.constant 0 : index
    %c0_23 = arith.constant 0 : index
    %24 = vector.load %arg4[%c1_20, %c1_21, %c0_22, %c0_23] : memref<2x4x2x256xf32, #tpu.memory_space<vmem>>, vector<1x1x2x256xf32>
    %25 = vector.shape_cast %24 : vector<1x1x2x256xf32> to vector<2x256xf32>
    %26 = vector.broadcast %1 : f32 to vector<2x256xf32>
    %27 = arith.mulf %26, %25 : vector<2x256xf32>
    %28 = arith.addf %23, %27 : vector<2x256xf32>
    %29 = vector.broadcast %0 : f32 to vector<2x256xf32>
    %30 = arith.mulf %29, %12 : vector<2x256xf32>
    %c1_24 = arith.constant 1 : index
    %c2_25 = arith.constant 2 : index
    %c0_26 = arith.constant 0 : index
    %c0_27 = arith.constant 0 : index
    %31 = vector.load %arg4[%c1_24, %c2_25, %c0_26, %c0_27] : memref<2x4x2x256xf32, #tpu.memory_space<vmem>>, vector<1x1x2x256xf32>
    %32 = vector.shape_cast %31 : vector<1x1x2x256xf32> to vector<2x256xf32>
    %33 = vector.broadcast %1 : f32 to vector<2x256xf32>
    %34 = arith.mulf %33, %32 : vector<2x256xf32>
    %35 = arith.addf %30, %34 : vector<2x256xf32>
    %36 = vector.broadcast %0 : f32 to vector<2x256xf32>
    %37 = arith.mulf %36, %14 : vector<2x256xf32>
    %c1_28 = arith.constant 1 : index
    %c3_29 = arith.constant 3 : index
    %c0_30 = arith.constant 0 : index
    %c0_31 = arith.constant 0 : index
    %38 = vector.load %arg4[%c1_28, %c3_29, %c0_30, %c0_31] : memref<2x4x2x256xf32, #tpu.memory_space<vmem>>, vector<1x1x2x256xf32>
    %39 = vector.shape_cast %38 : vector<1x1x2x256xf32> to vector<2x256xf32>
    %40 = vector.broadcast %1 : f32 to vector<2x256xf32>
    %41 = arith.mulf %40, %39 : vector<2x256xf32>
    %42 = arith.addf %37, %41 : vector<2x256xf32>
    %c0_32 = arith.constant 0 : index
    %43 = memref.load %arg2[%c0_32] : memref<16xf32, #tpu.memory_space<smem>>
    %44 = vector.broadcast %43 : f32 to vector<2x256xf32>
    %45 = arith.mulf %21, %44 : vector<2x256xf32>
    %c4_33 = arith.constant 4 : index
    %46 = memref.load %arg2[%c4_33] : memref<16xf32, #tpu.memory_space<smem>>
    %47 = vector.broadcast %46 : f32 to vector<2x256xf32>
    %48 = arith.mulf %28, %47 : vector<2x256xf32>
    %49 = arith.addf %45, %48 : vector<2x256xf32>
    %c8 = arith.constant 8 : index
    %50 = memref.load %arg2[%c8] : memref<16xf32, #tpu.memory_space<smem>>
    %51 = vector.broadcast %50 : f32 to vector<2x256xf32>
    %52 = arith.mulf %35, %51 : vector<2x256xf32>
    %53 = arith.addf %49, %52 : vector<2x256xf32>
    %c12 = arith.constant 12 : index
    %54 = memref.load %arg2[%c12] : memref<16xf32, #tpu.memory_space<smem>>
    %55 = vector.broadcast %54 : f32 to vector<2x256xf32>
    %56 = arith.mulf %42, %55 : vector<2x256xf32>
    %57 = arith.addf %53, %56 : vector<2x256xf32>
    %c0_34 = arith.constant 0 : index
    %58 = memref.load %arg3[%c0_34] : memref<4xf32, #tpu.memory_space<smem>>
    %59 = vector.broadcast %58 : f32 to vector<2x256xf32>
    %60 = arith.addf %57, %59 : vector<2x256xf32>
    %c1_35 = arith.constant 1 : index
    %61 = memref.load %arg2[%c1_35] : memref<16xf32, #tpu.memory_space<smem>>
    %62 = vector.broadcast %61 : f32 to vector<2x256xf32>
    %63 = arith.mulf %21, %62 : vector<2x256xf32>
    %c5_36 = arith.constant 5 : index
    %64 = memref.load %arg2[%c5_36] : memref<16xf32, #tpu.memory_space<smem>>
    %65 = vector.broadcast %64 : f32 to vector<2x256xf32>
    %66 = arith.mulf %28, %65 : vector<2x256xf32>
    %67 = arith.addf %63, %66 : vector<2x256xf32>
    %c9 = arith.constant 9 : index
    %68 = memref.load %arg2[%c9] : memref<16xf32, #tpu.memory_space<smem>>
    %69 = vector.broadcast %68 : f32 to vector<2x256xf32>
    %70 = arith.mulf %35, %69 : vector<2x256xf32>
    %71 = arith.addf %67, %70 : vector<2x256xf32>
    %c13 = arith.constant 13 : index
    %72 = memref.load %arg2[%c13] : memref<16xf32, #tpu.memory_space<smem>>
    %73 = vector.broadcast %72 : f32 to vector<2x256xf32>
    %74 = arith.mulf %42, %73 : vector<2x256xf32>
    %75 = arith.addf %71, %74 : vector<2x256xf32>
    %c1_37 = arith.constant 1 : index
    %76 = memref.load %arg3[%c1_37] : memref<4xf32, #tpu.memory_space<smem>>
    %77 = vector.broadcast %76 : f32 to vector<2x256xf32>
    %78 = arith.addf %75, %77 : vector<2x256xf32>
    %c2_38 = arith.constant 2 : index
    %79 = memref.load %arg2[%c2_38] : memref<16xf32, #tpu.memory_space<smem>>
    %80 = vector.broadcast %79 : f32 to vector<2x256xf32>
    %81 = arith.mulf %21, %80 : vector<2x256xf32>
    %c6_39 = arith.constant 6 : index
    %82 = memref.load %arg2[%c6_39] : memref<16xf32, #tpu.memory_space<smem>>
    %83 = vector.broadcast %82 : f32 to vector<2x256xf32>
    %84 = arith.mulf %28, %83 : vector<2x256xf32>
    %85 = arith.addf %81, %84 : vector<2x256xf32>
    %c10 = arith.constant 10 : index
    %86 = memref.load %arg2[%c10] : memref<16xf32, #tpu.memory_space<smem>>
    %87 = vector.broadcast %86 : f32 to vector<2x256xf32>
    %88 = arith.mulf %35, %87 : vector<2x256xf32>
    %89 = arith.addf %85, %88 : vector<2x256xf32>
    %c14 = arith.constant 14 : index
    %90 = memref.load %arg2[%c14] : memref<16xf32, #tpu.memory_space<smem>>
    %91 = vector.broadcast %90 : f32 to vector<2x256xf32>
    %92 = arith.mulf %42, %91 : vector<2x256xf32>
    %93 = arith.addf %89, %92 : vector<2x256xf32>
    %c2_40 = arith.constant 2 : index
    %94 = memref.load %arg3[%c2_40] : memref<4xf32, #tpu.memory_space<smem>>
    %95 = vector.broadcast %94 : f32 to vector<2x256xf32>
    %96 = arith.addf %93, %95 : vector<2x256xf32>
    %c3_41 = arith.constant 3 : index
    %97 = memref.load %arg2[%c3_41] : memref<16xf32, #tpu.memory_space<smem>>
    %98 = vector.broadcast %97 : f32 to vector<2x256xf32>
    %99 = arith.mulf %21, %98 : vector<2x256xf32>
    %c7 = arith.constant 7 : index
    %100 = memref.load %arg2[%c7] : memref<16xf32, #tpu.memory_space<smem>>
    %101 = vector.broadcast %100 : f32 to vector<2x256xf32>
    %102 = arith.mulf %28, %101 : vector<2x256xf32>
    %103 = arith.addf %99, %102 : vector<2x256xf32>
    %c11 = arith.constant 11 : index
    %104 = memref.load %arg2[%c11] : memref<16xf32, #tpu.memory_space<smem>>
    %105 = vector.broadcast %104 : f32 to vector<2x256xf32>
    %106 = arith.mulf %35, %105 : vector<2x256xf32>
    %107 = arith.addf %103, %106 : vector<2x256xf32>
    %c15 = arith.constant 15 : index
    %108 = memref.load %arg2[%c15] : memref<16xf32, #tpu.memory_space<smem>>
    %109 = vector.broadcast %108 : f32 to vector<2x256xf32>
    %110 = arith.mulf %42, %109 : vector<2x256xf32>
    %111 = arith.addf %107, %110 : vector<2x256xf32>
    %c3_42 = arith.constant 3 : index
    %112 = memref.load %arg3[%c3_42] : memref<4xf32, #tpu.memory_space<smem>>
    %113 = vector.broadcast %112 : f32 to vector<2x256xf32>
    %114 = arith.addf %111, %113 : vector<2x256xf32>
    %c0_43 = arith.constant 0 : index
    %115 = memref.load %arg2[%c0_43] : memref<16xf32, #tpu.memory_space<smem>>
    %116 = vector.broadcast %115 : f32 to vector<2x256xf32>
    %117 = arith.mulf %60, %116 : vector<2x256xf32>
    %c4_44 = arith.constant 4 : index
    %118 = memref.load %arg2[%c4_44] : memref<16xf32, #tpu.memory_space<smem>>
    %119 = vector.broadcast %118 : f32 to vector<2x256xf32>
    %120 = arith.mulf %78, %119 : vector<2x256xf32>
    %121 = arith.addf %117, %120 : vector<2x256xf32>
    %c8_45 = arith.constant 8 : index
    %122 = memref.load %arg2[%c8_45] : memref<16xf32, #tpu.memory_space<smem>>
    %123 = vector.broadcast %122 : f32 to vector<2x256xf32>
    %124 = arith.mulf %96, %123 : vector<2x256xf32>
    %125 = arith.addf %121, %124 : vector<2x256xf32>
    %c12_46 = arith.constant 12 : index
    %126 = memref.load %arg2[%c12_46] : memref<16xf32, #tpu.memory_space<smem>>
    %127 = vector.broadcast %126 : f32 to vector<2x256xf32>
    %128 = arith.mulf %114, %127 : vector<2x256xf32>
    %129 = arith.addf %125, %128 : vector<2x256xf32>
    %c0_47 = arith.constant 0 : index
    %130 = memref.load %arg3[%c0_47] : memref<4xf32, #tpu.memory_space<smem>>
    %131 = vector.broadcast %130 : f32 to vector<2x256xf32>
    %132 = arith.addf %129, %131 : vector<2x256xf32>
    %cst = arith.constant -1.000000e+00 : f32
    %cst_48 = arith.constant 1.000000e+00 : f32
    %133 = vector.broadcast %cst : f32 to vector<2x256xf32>
    %134 = arith.maximumf %133, %132 : vector<2x256xf32>
    %135 = vector.broadcast %cst_48 : f32 to vector<2x256xf32>
    %136 = arith.minimumf %135, %134 : vector<2x256xf32>
    %137 = vector.broadcast %2 : f32 to vector<2x256xf32>
    %138 = arith.mulf %137, %8 : vector<2x256xf32>
    %139 = vector.broadcast %3 : f32 to vector<2x256xf32>
    %140 = arith.mulf %139, %60 : vector<2x256xf32>
    %141 = arith.addf %138, %140 : vector<2x256xf32>
    %142 = vector.broadcast %4 : f32 to vector<2x256xf32>
    %143 = arith.mulf %142, %136 : vector<2x256xf32>
    %144 = arith.addf %141, %143 : vector<2x256xf32>
    %145 = arith.mulf %144, %144 : vector<2x256xf32>
    %c1_49 = arith.constant 1 : index
    %146 = memref.load %arg2[%c1_49] : memref<16xf32, #tpu.memory_space<smem>>
    %147 = vector.broadcast %146 : f32 to vector<2x256xf32>
    %148 = arith.mulf %60, %147 : vector<2x256xf32>
    %c5_50 = arith.constant 5 : index
    %149 = memref.load %arg2[%c5_50] : memref<16xf32, #tpu.memory_space<smem>>
    %150 = vector.broadcast %149 : f32 to vector<2x256xf32>
    %151 = arith.mulf %78, %150 : vector<2x256xf32>
    %152 = arith.addf %148, %151 : vector<2x256xf32>
    %c9_51 = arith.constant 9 : index
    %153 = memref.load %arg2[%c9_51] : memref<16xf32, #tpu.memory_space<smem>>
    %154 = vector.broadcast %153 : f32 to vector<2x256xf32>
    %155 = arith.mulf %96, %154 : vector<2x256xf32>
    %156 = arith.addf %152, %155 : vector<2x256xf32>
    %c13_52 = arith.constant 13 : index
    %157 = memref.load %arg2[%c13_52] : memref<16xf32, #tpu.memory_space<smem>>
    %158 = vector.broadcast %157 : f32 to vector<2x256xf32>
    %159 = arith.mulf %114, %158 : vector<2x256xf32>
    %160 = arith.addf %156, %159 : vector<2x256xf32>
    %c1_53 = arith.constant 1 : index
    %161 = memref.load %arg3[%c1_53] : memref<4xf32, #tpu.memory_space<smem>>
    %162 = vector.broadcast %161 : f32 to vector<2x256xf32>
    %163 = arith.addf %160, %162 : vector<2x256xf32>
    %cst_54 = arith.constant -1.000000e+00 : f32
    %cst_55 = arith.constant 1.000000e+00 : f32
    %164 = vector.broadcast %cst_54 : f32 to vector<2x256xf32>
    %165 = arith.maximumf %164, %163 : vector<2x256xf32>
    %166 = vector.broadcast %cst_55 : f32 to vector<2x256xf32>
    %167 = arith.minimumf %166, %165 : vector<2x256xf32>
    %168 = vector.broadcast %2 : f32 to vector<2x256xf32>
    %169 = arith.mulf %168, %10 : vector<2x256xf32>
    %170 = vector.broadcast %3 : f32 to vector<2x256xf32>
    %171 = arith.mulf %170, %78 : vector<2x256xf32>
    %172 = arith.addf %169, %171 : vector<2x256xf32>
    %173 = vector.broadcast %4 : f32 to vector<2x256xf32>
    %174 = arith.mulf %173, %167 : vector<2x256xf32>
    %175 = arith.addf %172, %174 : vector<2x256xf32>
    %176 = arith.mulf %175, %175 : vector<2x256xf32>
    %177 = arith.addf %145, %176 : vector<2x256xf32>
    %c2_56 = arith.constant 2 : index
    %178 = memref.load %arg2[%c2_56] : memref<16xf32, #tpu.memory_space<smem>>
    %179 = vector.broadcast %178 : f32 to vector<2x256xf32>
    %180 = arith.mulf %60, %179 : vector<2x256xf32>
    %c6_57 = arith.constant 6 : index
    %181 = memref.load %arg2[%c6_57] : memref<16xf32, #tpu.memory_space<smem>>
    %182 = vector.broadcast %181 : f32 to vector<2x256xf32>
    %183 = arith.mulf %78, %182 : vector<2x256xf32>
    %184 = arith.addf %180, %183 : vector<2x256xf32>
    %c10_58 = arith.constant 10 : index
    %185 = memref.load %arg2[%c10_58] : memref<16xf32, #tpu.memory_space<smem>>
    %186 = vector.broadcast %185 : f32 to vector<2x256xf32>
    %187 = arith.mulf %96, %186 : vector<2x256xf32>
    %188 = arith.addf %184, %187 : vector<2x256xf32>
    %c14_59 = arith.constant 14 : index
    %189 = memref.load %arg2[%c14_59] : memref<16xf32, #tpu.memory_space<smem>>
    %190 = vector.broadcast %189 : f32 to vector<2x256xf32>
    %191 = arith.mulf %114, %190 : vector<2x256xf32>
    %192 = arith.addf %188, %191 : vector<2x256xf32>
    %c2_60 = arith.constant 2 : index
    %193 = memref.load %arg3[%c2_60] : memref<4xf32, #tpu.memory_space<smem>>
    %194 = vector.broadcast %193 : f32 to vector<2x256xf32>
    %195 = arith.addf %192, %194 : vector<2x256xf32>
    %cst_61 = arith.constant -1.000000e+00 : f32
    %cst_62 = arith.constant 1.000000e+00 : f32
    %196 = vector.broadcast %cst_61 : f32 to vector<2x256xf32>
    %197 = arith.maximumf %196, %195 : vector<2x256xf32>
    %198 = vector.broadcast %cst_62 : f32 to vector<2x256xf32>
    %199 = arith.minimumf %198, %197 : vector<2x256xf32>
    %200 = vector.broadcast %2 : f32 to vector<2x256xf32>
    %201 = arith.mulf %200, %12 : vector<2x256xf32>
    %202 = vector.broadcast %3 : f32 to vector<2x256xf32>
    %203 = arith.mulf %202, %96 : vector<2x256xf32>
    %204 = arith.addf %201, %203 : vector<2x256xf32>
    %205 = vector.broadcast %4 : f32 to vector<2x256xf32>
    %206 = arith.mulf %205, %199 : vector<2x256xf32>
    %207 = arith.addf %204, %206 : vector<2x256xf32>
    %208 = arith.mulf %207, %207 : vector<2x256xf32>
    %209 = arith.addf %177, %208 : vector<2x256xf32>
    %c3_63 = arith.constant 3 : index
    %210 = memref.load %arg2[%c3_63] : memref<16xf32, #tpu.memory_space<smem>>
    %211 = vector.broadcast %210 : f32 to vector<2x256xf32>
    %212 = arith.mulf %60, %211 : vector<2x256xf32>
    %c7_64 = arith.constant 7 : index
    %213 = memref.load %arg2[%c7_64] : memref<16xf32, #tpu.memory_space<smem>>
    %214 = vector.broadcast %213 : f32 to vector<2x256xf32>
    %215 = arith.mulf %78, %214 : vector<2x256xf32>
    %216 = arith.addf %212, %215 : vector<2x256xf32>
    %c11_65 = arith.constant 11 : index
    %217 = memref.load %arg2[%c11_65] : memref<16xf32, #tpu.memory_space<smem>>
    %218 = vector.broadcast %217 : f32 to vector<2x256xf32>
    %219 = arith.mulf %96, %218 : vector<2x256xf32>
    %220 = arith.addf %216, %219 : vector<2x256xf32>
    %c15_66 = arith.constant 15 : index
    %221 = memref.load %arg2[%c15_66] : memref<16xf32, #tpu.memory_space<smem>>
    %222 = vector.broadcast %221 : f32 to vector<2x256xf32>
    %223 = arith.mulf %114, %222 : vector<2x256xf32>
    %224 = arith.addf %220, %223 : vector<2x256xf32>
    %c3_67 = arith.constant 3 : index
    %225 = memref.load %arg3[%c3_67] : memref<4xf32, #tpu.memory_space<smem>>
    %226 = vector.broadcast %225 : f32 to vector<2x256xf32>
    %227 = arith.addf %224, %226 : vector<2x256xf32>
    %cst_68 = arith.constant -1.000000e+00 : f32
    %cst_69 = arith.constant 1.000000e+00 : f32
    %228 = vector.broadcast %cst_68 : f32 to vector<2x256xf32>
    %229 = arith.maximumf %228, %227 : vector<2x256xf32>
    %230 = vector.broadcast %cst_69 : f32 to vector<2x256xf32>
    %231 = arith.minimumf %230, %229 : vector<2x256xf32>
    %232 = vector.broadcast %2 : f32 to vector<2x256xf32>
    %233 = arith.mulf %232, %14 : vector<2x256xf32>
    %234 = vector.broadcast %3 : f32 to vector<2x256xf32>
    %235 = arith.mulf %234, %114 : vector<2x256xf32>
    %236 = arith.addf %233, %235 : vector<2x256xf32>
    %237 = vector.broadcast %4 : f32 to vector<2x256xf32>
    %238 = arith.mulf %237, %231 : vector<2x256xf32>
    %239 = arith.addf %236, %238 : vector<2x256xf32>
    %240 = arith.mulf %239, %239 : vector<2x256xf32>
    %241 = arith.addf %209, %240 : vector<2x256xf32>
    %cst_70 = arith.constant dense<0.000000e+00> : vector<2xf32>
    %242 = vector.multi_reduction <add>, %241, %cst_70 [1] : vector<2x256xf32> to vector<2xf32>
    %243 = vector.shape_cast %242 : vector<2xf32> to vector<2x1xf32>
    %244 = vector.broadcast %5 : f32 to vector<2x1xf32>
    %245 = arith.mulf %244, %243 : vector<2x1xf32>
    %246 = vector.broadcast %6 : f32 to vector<2x1xf32>
    %247 = arith.addf %245, %246 : vector<2x1xf32>
    %cst_71 = arith.constant 0.000000e+00 : f32
    %248 = vector.broadcast %cst_71 : f32 to vector<1x8x128xf32>
    %c0_72 = arith.constant 0 : index
    %c0_73 = arith.constant 0 : index
    %c0_74 = arith.constant 0 : index
    %249 = vector.load %arg5[%c0_72, %c0_73, %c0_74] : memref<1x8x128xf32, #tpu.memory_space<vmem>>, vector<1x8x128xf32>
    tpu.vector_store %arg5[%c0_72, %c0_73, %c0_74], %248 {strides = array<i32>} : memref<1x8x128xf32, #tpu.memory_space<vmem>>, vector<1x8x128xf32>,
    %250 = vector.shape_cast %247 : vector<2x1xf32> to vector<2x1xf32>
    %251 = vector.broadcast %250 : vector<2x1xf32> to vector<2x128xf32>
    %c0_75 = arith.constant 0 : index
    %c0_76 = arith.constant 0 : index
    %c0_77 = arith.constant 0 : index
    %252 = vector.load %arg5[%c0_75, %c0_76, %c0_77] : memref<1x8x128xf32, #tpu.memory_space<vmem>>, vector<1x2x128xf32>
    %253 = vector.shape_cast %252 : vector<1x2x128xf32> to vector<2x128xf32>
    %254 = vector.shape_cast %251 : vector<2x128xf32> to vector<1x2x128xf32>
    tpu.vector_store %arg5[%c0_75, %c0_76, %c0_77], %254 {strides = array<i32>} : memref<1x8x128xf32, #tpu.memory_space<vmem>>, vector<1x2x128xf32>,
    return
  }
  func.func @transform_0(%arg0: i32) -> i32 {
    %c0_i32 = arith.constant 0 : i32
    %c0_i32_0 = arith.constant 0 : i32
    return %c0_i32 : i32
  }
  func.func @transform_1(%arg0: i32) -> i32 {
    %c0_i32 = arith.constant 0 : i32
    %c0_i32_0 = arith.constant 0 : i32
    return %c0_i32 : i32
  }
  func.func @transform_2(%arg0: i32) -> i32 {
    %c0_i32 = arith.constant 0 : i32
    %c0_i32_0 = arith.constant 0 : i32
    return %c0_i32 : i32
  }
  func.func @transform_3(%arg0: i32) -> (i32, i32, i32, i32) {
    %c0_i32 = arith.constant 0 : i32
    %c0_i32_0 = arith.constant 0 : i32
    %c0_i32_1 = arith.constant 0 : i32
    %c0_i32_2 = arith.constant 0 : i32
    return %c0_i32, %c0_i32_0, %arg0, %c0_i32_1 : i32, i32, i32, i32
  }
  func.func @transform_4(%arg0: i32) -> (i32, i32, i32) {
    %c0_i32 = arith.constant 0 : i32
    %c0_i32_0 = arith.constant 0 : i32
    %c0_i32_1 = arith.constant 0 : i32
    return %arg0, %c0_i32, %c0_i32_0 : i32, i32, i32
  }
}

</mosaic_0001>

<bundles_post_ra>
// kernel: diffusion_forward.1
= control target key start
LH: loop header
LB: loop body
LE: loop exit
PB: predicated region body
PF: predicated region fallthrough
CT: control target
= control target key end

     0   :  { %9 = vsyncpa [#allocation3], 0  ;;  %s514_s0 = inlined_call_operand.vmem [shape: f32[8], index: 0, kind: input, shape index: {}]   ;;  %s515_s1 = inlined_call_operand.vmem [shape: f32[16], index: 1, kind: input, shape index: {}]   ;;  %s516_s2 = inlined_call_operand.vmem [shape: f32[4], index: 2, kind: input, shape index: {}]   ;;  %s517_s3 = inlined_call_operand.vmem [shape: f32[2,4,2,256], index: 3, kind: input, shape index: {}]   ;;  %s518_s4 = inlined_call_operand.vmem [shape: f32[1,8,128], index: 4, kind: output, shape index: {}]  }
   0x1   :  { %10 = vsyncpa [#allocation5], 0  ;;  %s27_s17 = sshll.u32 %s515_s1, 4  ;;  %s17_s20 = sshll.u32 %s514_s0, 4  ;;  %s28_s17 = int_to_ptr.vmem [resolvable:$true] %s27_s17  ;;  %s18_s20 = int_to_ptr.vmem [resolvable:$true] %s17_s20 }
   0x2   :  { %s300_s21 = scalar_lea.vmem %s28_s17, 16  ;;  %p305_p1 = scmp.lt.s32.totalorder %s28_s17, %s28_s17 }
   0x3   :  { %p301_p0 = scmp.ne.s32.totalorder %s28_s17, %s300_s21  ;;  %p306_p2 = scmp.lt.s32.totalorder %s300_s21, %s300_s21 }
   0x5   :  { %p307_p3 = por %p306_p2, %p305_p1 }
   0x7   :  { %p308_p4 = pnand %p307_p3, %p301_p0 }
   0x9   :  { %311 = shalt.err (!%p308_p4)
}
   0xa   :  { %s340_s22 = smov [#allocation4]   ;;  %s312_s23 = scalar_lea.vmem %s18_s20, 16 }
   0xb   :  { %30 = dma.vmem_to_smem %s28_s17, 16, %s340_s22, [#allocation5]  }
   0xc   :  { %p313_p5 = scmp.ne.s32.totalorder %s18_s20, %s312_s23  ;;  %p317_p6 = scmp.lt.s32.totalorder %s18_s20, %s18_s20 }
   0xd   :  { %p318_p7 = scmp.lt.s32.totalorder %s312_s23, %s312_s23 }
   0xf   :  { %p319_p8 = por %p318_p7, %p317_p6 }
  0x11   :  { %p320_p9 = pnand %p319_p8, %p313_p5 }
  0x13   :  { %323 = shalt.err (!%p320_p9)
}
  0x14   :  { %s341_s1 = smov [#allocation2]   ;;  %s37_s25 = sshll.u32 %s516_s2, 4  ;;  %s38_s25 = int_to_ptr.vmem [resolvable:$true] %s37_s25 }
  0x15   :  { %20 = dma.vmem_to_smem %s18_s20, 16, %s341_s1, [#allocation3]  }
  0x16   :  { %s324_s26 = scalar_lea.vmem %s38_s25, 16  ;;  %p329_p11 = scmp.lt.s32.totalorder %s38_s25, %s38_s25 }
  0x17   :  { %p325_p10 = scmp.ne.s32.totalorder %s38_s25, %s324_s26  ;;  %p330_p12 = scmp.lt.s32.totalorder %s324_s26, %s324_s26 }
  0x19   :  { %p331_p13 = por %p330_p12, %p329_p11 }
  0x1b   :  { %p332_p0 = pnand %p331_p13, %p325_p10 }
  0x1d   :  { %335 = shalt.err (!%p332_p0)
}
  0x1e   :  { %s342_s27 = smov [#allocation6]  }
  0x1f   :  { %40 = dma.vmem_to_smem %s38_s25, 16, %s342_s27, [#allocation5]  }
  0x20   :  { %336 = dma.done.wait [#allocation3], 16  }
  0x21   :  { %337 = vsyncadd [#allocation3], 4294967280 }
  0x22   :  { %338 = dma.done.wait [#allocation5], 32  }
  0x23   :  { %339 = vsyncadd [#allocation5], 4294967264 }
  0x24   :  { %52 = sfence }
  0x25   :  { %s53_s28 = sld [smem:[#allocation2]]  ;;  %s260_s29 = sld [smem:[#allocation2 + $0x1]]  ;;  %v382_v0 = vld [vmem:[%s517_s3] sm:$0xf]  ;;  %v387_v1 = vld [vmem:[%s517_s3 + $0x4] sm:$0xf] }
  0x26   :  { %v392_v2 = vld [vmem:[%s517_s3 + $0x8] sm:$0xf]  ;;  %v397_v3 = vld [vmem:[%s517_s3 + $0xc] sm:$0xf]  ;;  %v269_v4 = vld [vmem:[%s517_s3 + $0x10] sm:$0xf] }
  0x27   :  { %v270_v5 = vld [vmem:[%s517_s3 + $0x14] sm:$0xf]  ;;  %v271_v6 = vld [vmem:[%s517_s3 + $0x18] sm:$0xf]  ;;  %v272_v7 = vld [vmem:[%s517_s3 + $0x1c] sm:$0xf] }
  0x28   :  { %s411_s19 = sld [smem:[#allocation4]]  ;;  %s413_s20 = sld [smem:[#allocation4 + $0x4]]  ;;  %vm242_vm0 = vcmask 1041408  }
  0x29   :  { %s415_s21 = sld [smem:[#allocation4 + $0x8]]  ;;  %s417_s22 = sld [smem:[#allocation4 + $0xc]] }
  0x2a   :  { %s421_s23 = sld [smem:[#allocation6]]  ;;  %s423_s3 = sld [smem:[#allocation4 + $0x1]] }
  0x2b   :  { %v67_v8 = vstv %s53_s28  ;;  %v71_v9 = vstv %s260_s29  ;;  %s427_s1 = sld [smem:[#allocation4 + $0x5]]  ;;  %s429_s0 = sld [smem:[#allocation4 + $0x9]] }
  0x2c   :  { %v68_v10 = vmul.f32 %v67_v8, %v382_v0  ;;  %v72_v11 = vmul.f32 %v269_v4, %v71_v9  ;;  %v74_v12 = vmul.f32 %v387_v1, %v67_v8  ;;  %v77_v13 = vmul.f32 %v270_v5, %v71_v9  ;;  %s431_s24 = sld [smem:[#allocation4 + $0xd]]  ;;  %s433_s25 = sld [smem:[#allocation6 + $0x1]] }
  0x2d   :  { %v79_v14 = vmul.f32 %v392_v2, %v67_v8  ;;  %v82_v15 = vmul.f32 %v271_v6, %v71_v9  ;;  %v84_v16 = vmul.f32 %v397_v3, %v67_v8  ;;  %v87_v17 = vmul.f32 %v272_v7, %v71_v9  ;;  %s435_s26 = sld [smem:[#allocation4 + $0x2]]  ;;  %s437_s27 = sld [smem:[#allocation4 + $0x6]] }
  0x2e   :  { %v73_v18 = vadd.f32 %v72_v11, %v68_v10  ;;  %v78_v19 = vadd.f32 %v77_v13, %v74_v12  ;;  %v90_v22 = vstv %s411_s19  ;;  %v93_v23 = vstv %s413_s20  ;;  %s441_s28 = sld [smem:[#allocation4 + $0xa]]  ;;  %s443_s29 = sld [smem:[#allocation4 + $0xe]] }
  0x2f   :  { %v83_v20 = vadd.f32 %v82_v15, %v79_v14  ;;  %v88_v21 = vadd.f32 %v87_v17, %v84_v16  ;;  %v97_v26 = vstv %s415_s21  ;;  %v101_v27 = vstv %s417_s22  ;;  %s447_s30 = sld [smem:[#allocation4 + $0x3]]  ;;  %s454_s5 = sld [smem:[#allocation4 + $0x7]] }
  0x30   :  { %v91_v24 = vmul.f32 %v90_v22, %v73_v18  ;;  %v94_v25 = vmul.f32 %v93_v23, %v78_v19  ;;  %v108_v30 = vstv %s423_s3  ;;  %s456_s2 = sld [smem:[#allocation4 + $0xb]]  ;;  %s460_s6 = sld [smem:[#allocation6 + $0x2]]  ;;  %v105_v35 = vstv %s421_s23 }
  0x31   :  { %v98_v28 = vmul.f32 %v97_v26, %v83_v20  ;;  %v102_v29 = vmul.f32 %v101_v27, %v88_v21  ;;  %v109_v32 = vmul.f32 %v108_v30, %v73_v18  ;;  %v111_v33 = vstv %s427_s1  ;;  %s462_s7 = sld [smem:[#allocation4 + $0xf]]  ;;  %s471_s8 = sld [smem:[#allocation2 + $0x2]] }
  0x32   :  { %v95_v31 = vadd.f32 %v94_v25, %v91_v24  ;;  %v115_v34 = vstv %s429_s0  ;;  %v112_v36 = vmul.f32 %v111_v33, %v78_v19  ;;  %v119_v38 = vstv %s431_s24  ;;  %s475_s9 = sld [smem:[#allocation6 + $0x3]]  ;;  %s492_s11 = sld [smem:[#allocation2 + $0x4]] }
  0x33   :  { %v116_v37 = vmul.f32 %v115_v34, %v83_v20  ;;  %v120_v40 = vmul.f32 %v119_v38, %v88_v21  ;;  %v126_v41 = vstv %s435_s26  ;;  %v129_v42 = vstv %s437_s27  ;;  %s478_s10 = sld [smem:[#allocation2 + $0x3]]  ;;  %s264_s14 = sld [smem:[#allocation2 + $0x5]] }
  0x34   :  { %v99_v39 = vadd.f32 %v98_v28, %v95_v31  ;;  %v113_v43 = vadd.f32 %v112_v36, %v109_v32  ;;  %v127_v44 = vmul.f32 %v126_v41, %v73_v18  ;;  %v130_v45 = vmul.f32 %v129_v42, %v78_v19  ;;  %s265_s15 = sld [smem:[#allocation2 + $0x6]] }
  0x35   :  { %v133_v46 = vstv %s441_s28  ;;  %v123_v48 = vstv %s433_s25  ;;  %v137_v50 = vstv %s443_s29  ;;  %v144_v54 = vstv %s447_s30 }
  0x36   :  { %v103_v47 = vadd.f32 %v102_v29, %v99_v39  ;;  %v134_v49 = vmul.f32 %v133_v46, %v83_v20  ;;  %v117_v51 = vadd.f32 %v116_v37, %v113_v43  ;;  %v131_v52 = vadd.f32 %v130_v45, %v127_v44 }
  0x37   :  { %v138_v53 = vmul.f32 %v137_v50, %v88_v21  ;;  %v145_v56 = vmul.f32 %v144_v54, %v73_v18  ;;  %v147_v57 = vstv %s454_s5  ;;  %v151_v58 = vstv %s456_s2 }
  0x38   :  { %v106_v55 = vadd.f32 %v105_v35, %v103_v47  ;;  %v121_v59 = vadd.f32 %v120_v40, %v117_v51  ;;  %v135_v60 = vadd.f32 %v134_v49, %v131_v52  ;;  %v148_v61 = vmul.f32 %v147_v57, %v78_v19 }
  0x39   :  { %v152_v62 = vmul.f32 %v151_v58, %v83_v20  ;;  %v141_v63 = vstv %s460_s6  ;;  %v155_v4 = vstv %s462_s7  ;;  %v159_v17 = vstv %s475_s9 }
  0x3a   :  { %v161_v5 = vmul.f32 %v106_v55, %v90_v22  ;;  %v124_v6 = vadd.f32 %v123_v48, %v121_v59  ;;  %v139_v7 = vadd.f32 %v138_v53, %v135_v60  ;;  %v149_v8 = vadd.f32 %v148_v61, %v145_v56 }
  0x3b   :  { %v156_v9 = vmul.f32 %v155_v4, %v88_v21  ;;  %v180_v10 = vmul.f32 %v108_v30, %v106_v55  ;;  %v197_v11 = vmul.f32 %v126_v41, %v106_v55  ;;  %v214_v12 = vmul.f32 %v144_v54, %v106_v55 }
  0x3c   :  { %v142_v13 = vadd.f32 %v141_v63, %v139_v7  ;;  %v153_v14 = vadd.f32 %v152_v62, %v149_v8  ;;  %v162_v15 = vmul.f32 %v124_v6, %v93_v23  ;;  %v181_v16 = vmul.f32 %v124_v6, %v111_v33 }
  0x3d   :  { %v171_v18 = vstv %s471_s8  ;;  %v198_v19 = vmul.f32 %v129_v42, %v124_v6  ;;  %v215_v20 = vmul.f32 %v147_v57, %v124_v6  ;;  %v173_v21 = vstv %s478_s10 }
  0x3e   :  { %v157_v24 = vadd.f32 %v156_v9, %v153_v14  ;;  %v163_v22 = vadd.f32 %v162_v15, %v161_v5  ;;  %v164_v25 = vmul.f32 %v142_v13, %v97_v26  ;;  %v182_v28 = vadd.f32 %v181_v16, %v180_v10 }
  0x3f   :  { %v183_v29 = vmul.f32 %v142_v13, %v115_v34  ;;  %v199_v30 = vadd.f32 %v198_v19, %v197_v11  ;;  %v200_v31 = vmul.f32 %v142_v13, %v133_v46  ;;  %v172_v33 = vmul.f32 %v171_v18, %v382_v0 }
  0x40   :  { %v160_v32 = vadd.f32 %v159_v17, %v157_v24  ;;  %v165_v23 = vadd.f32 %v164_v25, %v163_v22  ;;  %v216_v36 = vadd.f32 %v215_v20, %v214_v12  ;;  %v190_v39 = vmul.f32 %v387_v1, %v171_v18 }
  0x41   :  { %v184_v37 = vadd.f32 %v183_v29, %v182_v28  ;;  %v201_v40 = vadd.f32 %v200_v31, %v199_v30  ;;  %v217_v41 = vmul.f32 %v151_v58, %v142_v13  ;;  %v207_v34 = vmul.f32 %v392_v2, %v171_v18 }
  0x42   :  { %v166_v26 = vmul.f32 %v160_v32, %v101_v27  ;;  %v185_v42 = vmul.f32 %v160_v32, %v119_v38  ;;  %v202_v43 = vmul.f32 %v160_v32, %v137_v50  ;;  %v174_v44 = vmul.f32 %v173_v21, %v106_v55 }
  0x43   :  { %v191_v45 = vmul.f32 %v173_v21, %v124_v6  ;;  %v218_v46 = vadd.f32 %v217_v41, %v216_v36  ;;  %v219_v0 = vmul.f32 %v160_v32, %v155_v4  ;;  %v208_v1 = vmul.f32 %v173_v21, %v142_v13 }
  0x44   :  { %v167_v47 = vadd.f32 %v166_v26, %v165_v23  ;;  %v186_v49 = vadd.f32 %v185_v42, %v184_v37  ;;  %v203_v51 = vadd.f32 %v202_v43, %v201_v40  ;;  %v224_v53 = vmul.f32 %v397_v3, %v171_v18 }
  0x45   :  { %v220_v52 = vadd.f32 %v219_v0, %v218_v46  ;;  %v225_v54 = vmul.f32 %v173_v21, %v160_v32  ;;  %v175_v56 = vadd.f32 %v174_v44, %v172_v33  ;;  %v176_v2 = vstv %s492_s11 }
  0x46   :  { %v168_v27 = vadd.f32 %v167_v47, %v105_v35  ;;  %v187_v38 = vadd.f32 %v186_v49, %v123_v48  ;;  %v204_v50 = vadd.f32 %v203_v51, %v141_v63  ;;  %v192_v57 = vadd.f32 %v191_v45, %v190_v39 }
  0x47   :  { %v221_v55 = vadd.f32 %v220_v52, %v159_v17  ;;  %v209_v61 = vadd.f32 %v208_v1, %v207_v34  ;;  %v226_v4 = vadd.f32 %v225_v54, %v224_v53  ;;  %v235_v5 = vlaneseq }
  0x48   :  { %v291_v58 = vclamps-f32 %v168_v27, 1.0  ;;  %v292_v59 = vclamps-f32 %v187_v38, 1.0  ;;  %v293_v60 = vclamps-f32 %v204_v50, 1.0  ;;  %v343_v8 = vmov 1983009808  }
  0x49   :  { %v294_v62 = vclamps-f32 %v221_v55, 1.0  ;;  %v233_v9 = vunpack.c.l.s4 %v343_v8  ;;  %v236_v12 = vshrl.u32 %v235_v5, 7  ;;  %v344_v30 = vmov 0.0  }
  0x4a   :  { %v177_v6 = vmul.f32 %v291_v58, %v176_v2  ;;  %v193_v7 = vmul.f32 %v292_v59, %v176_v2  ;;  %v210_v3 = vmul.f32 %v293_v60, %v176_v2  ;;  %252 = vst [vmem:[%s518_s4] sm:$0xff] %v344_v30  ;;  %v248_v31 = vstv %s264_s14 }
  0x4b   :  { %v227_v35 = vmul.f32 %v294_v62, %v176_v2  ;;  %v234_v16 = vunpack.c.0.s8 %v233_v9  ;;  %v250_v23 = vstv %s265_s15 }
  0x4c   :  { %v178_v10 = vadd.f32 %v177_v6, %v175_v56  ;;  %v194_v48 = vadd.f32 %v193_v7, %v192_v57  ;;  %v211_v63 = vadd.f32 %v210_v3, %v209_v61 }
  0x4d   :  { %v228_v11 = vadd.f32 %v227_v35, %v226_v4  ;;  %v237_v20 = vsub.s32 %v234_v16, %v236_v12 }
  0x4e   :  { %v179_v13 = vmul.f32 %v178_v10, %v178_v10  ;;  %v195_v14 = vmul.f32 %v194_v48, %v194_v48  ;;  %v212_v15 = vmul.f32 %v211_v63, %v211_v63 }
  0x4f   :  { %v229_v18 = vmul.f32 %v228_v11, %v228_v11 }
  0x50   :  { %v196_v17 = vadd.f32 %v195_v14, %v179_v13 }
  0x52   :  { %v213_v19 = vadd.f32 %v212_v15, %v196_v17 }
  0x54   :  { %v230_v24 = vadd.f32 %v229_v18, %v213_v19 }
  0x56   :  { %v238_v22 = vrot.slane %v230_v24, %v237_v20 }
  0x58   :  { %v239_v25 = vcombine.high %v238_v22, %v238_v22  ;;  %v243_v28 = vsel %vm242_vm0, %v238_v22, 0.0 }
  0x5a   :  { %v244_v21 = vsel %vm242_vm0, %v239_v25, 0.0 }
  0x5b   :  { %v245_v29 = vadd.f32 %v244_v21, %v243_v28 }
  0x5d   :  { %246 = vadd.xlane.f32.xlu0 %v245_v29 }
  0xea   :  { %v247_v32 = vpop.xlane.xlu0 %246 }
  0xeb   :  { %v249_v33 = vmul.f32 %v248_v31, %v247_v32 }
  0xed   :  { %v251_v36 = vadd.f32 %v250_v23, %v249_v33 }
  0xef   :  { %253 = vst [vmem:[%s518_s4] sm:$0x3] %v251_v36 }
  0xf0   :  { %258 = vsyncpa [#allocation3], 1 }
  0xf1   :  { %259 = vsyncpa [#allocation5], 1 }

</bundles_post_ra>
